<compile_context>
chip_gen: v6e
topology: v6e:2x2x1
jax: 0.10.0
libtpu: 0.0.40
codegen_flags: <defaults>
</compile_context>

<pallas_src>
import jax
import jax.numpy as jnp
from jax.experimental import pallas as pl
from jax.experimental.pallas import tpu as pltpu


def _round_up(n, m):
    return ((n + m - 1) // m) * m


def _logreg_kernel(x_ref, w_ref, b_ref, o_ref):
    # x_ref: [TR, Fp]  w_ref: [Fp, Op]  b_ref: [1, Op]  o_ref: [TR, Op]
    logits = jnp.dot(x_ref[...], w_ref[...], preferred_element_type=jnp.float32)
    o_ref[...] = jax.nn.sigmoid(logits + b_ref[...]).astype(o_ref.dtype)


def logistic_regression_forward(x, weight, bias, *, vmem_budget_bytes=24 * 1024 * 1024):
    """x: [B, 21] f32, weight: [2, 21] f32 (PyTorch layout), bias: [2] f32 -> [B, 2]."""
    B, F = x.shape
    O = weight.shape[0]

    # ---- lane-packing factor: largest p with p*F <= 128 lanes and p | B ------
    max_pack = max(1, 128 // F)          # 6 for F=21
    pack = 1
    for p in range(max_pack, 0, -1):
        if B % p == 0:
            pack = p
            break
    # (For batch sizes with no small divisor, pack==1 falls back to the plain
    #  layout: still pad-free / transpose-free, just less lane-dense in VMEM.)

    R, Fp, Op = B // pack, pack * F, pack * O

    x_packed = x.reshape(R, Fp)                                        # free reshape
    w_packed = jnp.kron(jnp.eye(pack, dtype=weight.dtype), weight.T)   # (Fp, Op)
    b_packed = jnp.tile(bias, pack).reshape(1, Op)

    # ---- batch tiling from a VMEM byte budget --------------------------------
    # Double-buffered, lane-padded x tile + out tile per super-row.
    per_row_bytes = 2 * 4 * (_round_up(Fp, 128) + _round_up(Op, 128))
    tr_cap = max(8, (vmem_budget_bytes // per_row_bytes) // 8 * 8)
    num_tiles = pl.cdiv(R, tr_cap)
    if R > 8:
        num_tiles = max(num_tiles, 2)    # keep both v7x TensorCores fed
    tr = min(R, _round_up(pl.cdiv(R, num_tiles), 8))
    grid = (pl.cdiv(R, tr),)

    out_packed = pl.pallas_call(
        _logreg_kernel,
        out_shape=jax.ShapeDtypeStruct((R, Op), jnp.float32),
        grid_spec=pltpu.PrefetchScalarGridSpec(
            num_scalar_prefetch=0,
            grid=grid,
            in_specs=[
                pl.BlockSpec((tr, Fp), lambda i: (i, 0)),   # stream packed x rows
                pl.BlockSpec((Fp, Op), lambda i: (0, 0)),   # packed weight, resident
                pl.BlockSpec((1, Op), lambda i: (0, 0)),    # packed bias, resident
            ],
            out_specs=pl.BlockSpec((tr, Op), lambda i: (i, 0)),  # row-major output
        ),
        compiler_params=pltpu.CompilerParams(
            dimension_semantics=("parallel",),
            vmem_limit_bytes=min(56 * 1024 * 1024,
                                 tr * per_row_bytes + 8 * 1024 * 1024),
        ),
        cost_estimate=pl.CostEstimate(
            flops=2 * R * Fp * Op,
            transcendentals=R * Op,
            bytes_accessed=B * F * 4 + Fp * Op * 4 + Op * 4 + R * Op * 4,
        ),
    )(x_packed, w_packed, b_packed)

    # (R, pack*O) is row-major identical to (B, O): free metadata reshape.
    return out_packed.reshape(B, O)


def _reference(x, weight, bias):
    return jax.nn.sigmoid(x @ weight.T + bias)


if __name__ == "__main__":
    key = jax.random.PRNGKey(0)
    kx, kw, kb, kx2, kx3 = jax.random.split(key, 5)

    batch, in_features, out_features = 8, 21, 2
    # Deterministic parameter init mimicking nn.Linear's uniform(-1/sqrt(fan_in), ...)
    bound = 1.0 / jnp.sqrt(jnp.float32(in_features))
    weight = jax.random.uniform(kw, (out_features, in_features),
                                jnp.float32, -bound, bound)
    bias = jax.random.uniform(kb, (out_features,), jnp.float32, -bound, bound)

    # 1) Small batch: pack=4, single tile.
    x = jax.random.normal(kx, (batch, in_features), jnp.float32)
    out = jax.block_until_ready(logistic_regression_forward(x, weight, bias))
    ref = _reference(x, weight, bias)
    assert out.shape == (batch, out_features)
    assert jnp.allclose(out, ref, atol=1e-5, rtol=1e-5)

    # 2) batch=300: pack=6; two tiles (one partial) at the default VMEM budget,
    #    and four tiles under a deliberately tiny budget (multi-tile streaming).
    batch2 = 300
    x2 = jax.random.normal(kx2, (batch2, in_features), jnp.float32)
    ref2 = _reference(x2, weight, bias)
    for budget in (24 * 1024 * 1024, 32 * 1024):
        out2 = jax.block_until_ready(
            logistic_regression_forward(x2, weight, bias, vmem_budget_bytes=budget))
        assert out2.shape == (batch2, out_features)
        assert jnp.allclose(out2, ref2, atol=1e-5, rtol=1e-5)

    # 3) Prime batch: pack=1 fallback, partial trailing block, no padding needed.
    batch3 = 101
    x3 = jax.random.normal(kx3, (batch3, in_features), jnp.float32)
    out3 = jax.block_until_ready(logistic_regression_forward(x3, weight, bias))
    ref3 = _reference(x3, weight, bias)
    assert out3.shape == (batch3, out_features)
    assert jnp.allclose(out3, ref3, atol=1e-5, rtol=1e-5)

    print("KERNEL_OK")
</pallas_src>

<mosaic_0001>
module attributes {stable_mosaic.version = 11 : i64} {
  func.func @_logreg_kernel(%arg0: i32, %arg1: memref<2x84xf32, #tpu.memory_space<vmem>>, %arg2: memref<84x8xf32, #tpu.memory_space<vmem>>, %arg3: memref<1x8xf32, #tpu.memory_space<vmem>>, %arg4: memref<2x8xf32, #tpu.memory_space<vmem>>) attributes {dimension_semantics = [#tpu.dimension_semantics<parallel>], iteration_bounds = array<i64: 1>, scalar_prefetch = 0 : i64, scratch_operands = 0 : i64, tpu.core_type = #tpu.core_type<tc>, window_params = [{transform_indices = @transform_0, window_bounds = array<i64: 2, 84>}, {pipeline_mode = #tpu.pipeline_mode<synchronous>, transform_indices = @transform_1, window_bounds = array<i64: 84, 8>}, {pipeline_mode = #tpu.pipeline_mode<synchronous>, transform_indices = @transform_2, window_bounds = array<i64: 1, 8>}, {transform_indices = @transform_3, window_bounds = array<i64: 2, 8>}]} {
    %c0 = arith.constant 0 : index
    %c0_0 = arith.constant 0 : index
    %0 = vector.load %arg1[%c0, %c0_0] : memref<2x84xf32, #tpu.memory_space<vmem>>, vector<2x84xf32>
    %c0_1 = arith.constant 0 : index
    %c0_2 = arith.constant 0 : index
    %1 = vector.load %arg2[%c0_1, %c0_2] : memref<84x8xf32, #tpu.memory_space<vmem>>, vector<84x8xf32>
    %cst = arith.constant dense<0.000000e+00> : vector<2x8xf32>
    %2 = tpu.matmul %0, %1, %cst {dimension_numbers = #tpu.dot_dimension_numbers<[1], [0], [0], [1], [0, 0, 1, 1], [], []>} : vector<2x84xf32>, vector<84x8xf32>, vector<2x8xf32> -> vector<2x8xf32>
    %c0_3 = arith.constant 0 : index
    %c0_4 = arith.constant 0 : index
    %3 = vector.load %arg3[%c0_3, %c0_4] : memref<1x8xf32, #tpu.memory_space<vmem>>, vector<1x8xf32>
    %4 = vector.broadcast %3 : vector<1x8xf32> to vector<2x8xf32>
    %5 = arith.addf %2, %4 : vector<2x8xf32>
    %6 = arith.negf %5 : vector<2x8xf32>
    %7 = math.exp %6 : vector<2x8xf32>
    %cst_5 = arith.constant 1.000000e+00 : f32
    %8 = vector.broadcast %cst_5 : f32 to vector<2x8xf32>
    %9 = arith.addf %8, %7 : vector<2x8xf32>
    %10 = arith.divf %8, %9 : vector<2x8xf32>
    %c0_6 = arith.constant 0 : index
    %c0_7 = arith.constant 0 : index
    %11 = vector.load %arg4[%c0_6, %c0_7] : memref<2x8xf32, #tpu.memory_space<vmem>>, vector<2x8xf32>
    tpu.vector_store %arg4[%c0_6, %c0_7], %10 {strides = array<i32>} : memref<2x8xf32, #tpu.memory_space<vmem>>, vector<2x8xf32>,
    return
  }
  func.func @transform_0(%arg0: i32) -> (i32, i32) {
    %c0_i32 = arith.constant 0 : i32
    %c0_i32_0 = arith.constant 0 : i32
    return %arg0, %c0_i32 : i32, i32
  }
  func.func @transform_1(%arg0: i32) -> (i32, i32) {
    %c0_i32 = arith.constant 0 : i32
    %c0_i32_0 = arith.constant 0 : i32
    %c0_i32_1 = arith.constant 0 : i32
    return %c0_i32, %c0_i32_0 : i32, i32
  }
  func.func @transform_2(%arg0: i32) -> (i32, i32) {
    %c0_i32 = arith.constant 0 : i32
    %c0_i32_0 = arith.constant 0 : i32
    %c0_i32_1 = arith.constant 0 : i32
    return %c0_i32, %c0_i32_0 : i32, i32
  }
  func.func @transform_3(%arg0: i32) -> (i32, i32) {
    %c0_i32 = arith.constant 0 : i32
    %c0_i32_0 = arith.constant 0 : i32
    return %arg0, %c0_i32 : i32, i32
  }
}

</mosaic_0001>

<bundles_post_ra>
// kernel: tpu_custom_call.1
= control target key start
LH: loop header
LB: loop body
LE: loop exit
PB: predicated region body
PF: predicated region fallthrough
CT: control target
= control target key end

     0   :  { %vm38_vm0 = vcmask 1043456   ;;  %v204_v1 = vmov 0.0   ;;  %vm205_vm1 = vmmov 0   ;;  %s269_s0 = inlined_call_operand.vmem [shape: f32[2,84], index: 0, kind: input, shape index: {}]   ;;  %s270_s1 = inlined_call_operand.vmem [shape: f32[84,8], index: 1, kind: input, shape index: {}]   ;;  %s271_s2 = inlined_call_operand.vmem [shape: f32[1,8], index: 2, kind: input, shape index: {}]   ;;  %s272_s3 = inlined_call_operand.hbm [shape: f32[2,8], index: 3, kind: output, shape index: {}]  }
   0x1   :  { %v26_v0 = vld [vmem:[%s270_s1 + $0x50] sm:$0xf]  ;;  %150 = vmatprep.subr.mxu0 %v204_v1  ;;  %v25_v2 = vld [vmem:[%s270_s1 + $0x48] sm:$0xff]  ;;  %172 = vmatprep.mubr.msk.f32.mxu0 %vm205_vm1, %v204_v1  ;;  %v24_v3 = vld [vmem:[%s270_s1 + $0x40] sm:$0xff] }
   0x2   :  { %151 = vmatpush3.msk.msra.mxu0 %vm38_vm0, %v26_v0 }
   0x3   :  { %152 = vmatprep.subr.mxu0 %v204_v1 }
   0x4   :  { %153 = vmatpush3.msra.mxu0 %v25_v2 }
   0x5   :  { %8 = vsyncpa [#allocation3], 0  ;;  %154 = vmatprep.subr.mxu0 %v204_v1  ;;  %v23_v4 = vld [vmem:[%s270_s1 + $0x38] sm:$0xff]  ;;  %v22_v5 = vld [vmem:[%s270_s1 + $0x30] sm:$0xff]  ;;  %vm34_vm2 = vcmask 687104   ;;  %vm118_vm3 = vcmask 58368  }
   0x6   :  { %155 = vmatpush3.msra.mxu0 %v24_v3  ;;  %v21_v6 = vld [vmem:[%s270_s1 + $0x28] sm:$0xff]  ;;  %v20_v7 = vld [vmem:[%s270_s1 + $0x20] sm:$0xff]  ;;  %v19_v8 = vld [vmem:[%s270_s1 + $0x18] sm:$0xff] }
   0x7   :  { %156 = vmatprep.subr.mxu0 %v204_v1  ;;  %v18_v9 = vld [vmem:[%s270_s1 + $0x10] sm:$0xff]  ;;  %v17_v10 = vld [vmem:[%s270_s1 + $0x8] sm:$0xff]  ;;  %v16_v11 = vld [vmem:[%s270_s1] sm:$0xff]  ;;  %s206_s1 = smov [#allocation2]  }
   0x8   :  { %157 = vmatpush3.msra.mxu0 %v23_v4  ;;  %v15_v12 = vld [vmem:[%s269_s0] sm:$0x3]  ;;  %s126_s11 = sshll.u32 %s206_s1, 4  ;;  %s127_s11 = int_to_ptr.vmem [resolvable:$true] %s126_s11 }
   0x9   :  { %158 = vmatprep.subr.mxu0 %v204_v1  ;;  %v134_v13 = vld [vmem:[%s271_s2] ss:$0 sm:$0xff]  ;;  %s182_s0 = scalar_lea.vmem %s127_s11, 32  ;;  %p187_p1 = scmp.lt.s32.totalorder %s127_s11, %s127_s11 }
   0xa   :  { %159 = vmatpush3.msra.mxu0 %v22_v5  ;;  %p183_p0 = scmp.ne.s32.totalorder %s127_s11, %s182_s0  ;;  %p188_p2 = scmp.lt.s32.totalorder %s182_s0, %s182_s0 }
   0xb   :  { %160 = vmatprep.subr.mxu0 %v204_v1 }
   0xc   :  { %161 = vmatpush3.msra.mxu0 %v21_v6  ;;  %p189_p3 = por %p188_p2, %p187_p1 }
   0xd   :  { %162 = vmatprep.subr.mxu0 %v204_v1 }
   0xe   :  { %163 = vmatpush3.msra.mxu0 %v20_v7  ;;  %p190_p4 = pnand %p189_p3, %p183_p0 }
   0xf   :  { %164 = vmatprep.subr.mxu0 %v204_v1 }
  0x10   :  { %165 = vmatpush3.msra.mxu0 %v19_v8 }
  0x11   :  { %166 = vmatprep.subr.mxu0 %v204_v1 }
  0x12   :  { %167 = vmatpush3.msra.mxu0 %v18_v9 }
  0x13   :  { %168 = vmatprep.subr.mxu0 %v204_v1 }
  0x14   :  { %169 = vmatpush3.msra.mxu0 %v17_v10 }
  0x15   :  { %170 = vmatprep.subr.mxu0 %v204_v1 }
  0x16   :  { %171 = vmatpush3.msra.mxu0 %v16_v11 }
  0x17   :  { %173 = vmatmul.mubr.msk.f32.vlgmr.msra.gmra.mxu0 %vm34_vm2, %v15_v12 }
  0xd7   :  { %v108_v14 = vpop.f32.mrf.mxu0 }
  0xd8   :  { %v109_v15 = vadd.f32 %v134_v13, %v108_v14 }
  0xd9   :  { %v174_v16 = vpop.f32.mrf.mxu0 }
  0xda   :  { %v137_v17 = vmul.f32 -1.442695, %v109_v15 }
  0xdc   :  { %178 = vpow2.f32 %v137_v17 }
  0xe9   :  { %v179_v18 = vpop.eup %178 }
  0xea   :  { %v115_v19 = vadd.f32 1.0, %v179_v18 }
  0xec   :  { %180 = vrcp.f32 %v115_v19 }
  0xf9   :  { %v181_v20 = vpop.eup %180 }
  0xfa   :  { %119 = vst.msk [vmem:[#allocation2] sm:$0x3] %vm118_vm3, %v181_v20 }
  0xfb   :  { %193 = shalt.err (!%p190_p4)
}
  0xfc   :  { %129 = dma.vmem_to_hbm [thread:$0]  %s127_s11, 32, %s272_s3, [#allocation3]  }
  0xfd   :  { %202 = dma.done.wait [#allocation3], 32  }
  0xfe   :  { %203 = vsyncadd [#allocation3], 4294967264 }
  0xff   :  { %133 = vsyncpa [#allocation3], 1 }

</bundles_post_ra>
